<compile_context>
chip_gen: v6e
topology: v6e:2x2x1
jax: 0.10.0
libtpu: 0.0.40
codegen_flags: <defaults>
</compile_context>

<pallas_src>
import jax
import jax.numpy as jnp
from jax.experimental import pallas as pl
from jax.experimental.pallas import tpu as pltpu

_LANE = 128
_SUBLANE = 8
_TARGET_TILE_BYTES = 8 * 1024 * 1024   # ~8 MiB per block: per-step overhead <~6% even at v7x HBM BW
_VMEM_LIMIT_BYTES = 40 * 1024 * 1024   # 2 in + 2 out buffers (32 MiB) + headroom


def _sublane_granule(itemsize: int) -> int:
    # 8 rows for f32, 16 for bf16, 32 for int8/fp8 (native sublane packing).
    return max(_SUBLANE, 32 // itemsize)


def _pick_block_rows(rows: int, itemsize: int) -> int:
    """Byte-sized tiles, rounded to the dtype sublane granule, capped so the
    grid has >= 2 steps (megacore sharding on v7x)."""
    granule = _sublane_granule(itemsize)
    by_bytes = max(granule, _TARGET_TILE_BYTES // (_LANE * itemsize))
    half = pl.cdiv(pl.cdiv(rows, 2), granule) * granule   # ceil(rows/2) rounded up
    br = min(by_bytes, half)
    return max(granule, (br // granule) * granule)


def _neg_scale_kernel(coeff_ref, g_ref, o_ref):
    # coeff lives in SMEM: one scalar read per grid step, free relative to the
    # HBM-bound streaming loop, and no recompile when coeff changes value.
    neg_c = (-coeff_ref[0, 0]).astype(o_ref.dtype)
    o_ref[...] = g_ref[...] * neg_c


def _neg_scale_2d(g2d, coeff):
    rows, lanes = g2d.shape
    assert lanes == _LANE
    block_rows = _pick_block_rows(rows, g2d.dtype.itemsize)
    grid = (pl.cdiv(rows, block_rows),)
    gspec = pl.BlockSpec((block_rows, _LANE), lambda i: (i, 0))
    nbytes = g2d.size * g2d.dtype.itemsize
    return pl.pallas_call(
        _neg_scale_kernel,
        out_shape=jax.ShapeDtypeStruct(g2d.shape, g2d.dtype),
        grid=grid,
        in_specs=[pl.BlockSpec(memory_space=pltpu.MemorySpace.SMEM), gspec],
        out_specs=gspec,
        # Best-effort donation of the cotangent buffer (true alias when g is dead,
        # which is the normal backward-pass case; otherwise XLA inserts a copy).
        input_output_aliases={1: 0},
        compiler_params=pltpu.CompilerParams(
            dimension_semantics=("parallel",),
            vmem_limit_bytes=_VMEM_LIMIT_BYTES),
        cost_estimate=pl.CostEstimate(
            flops=g2d.size, transcendentals=0, bytes_accessed=2 * nbytes),
    )(coeff.reshape(1, 1), g2d)


def _neg_scale(g, coeff):
    """Elementwise -coeff * g for arbitrary shapes, no padding / slice / concat."""
    n = g.size
    granule = _sublane_granule(g.dtype.itemsize)
    if n % _LANE != 0 or n < 2 * granule * _LANE:
        # Ragged or tiny: a single fused XLA elementwise (one read + one write)
        # is strictly cheaper than any slice+kernel+concat combination.
        return g * (-coeff).astype(g.dtype)
    rows = n // _LANE
    out2d = _neg_scale_2d(g.reshape(rows, _LANE), coeff)
    return out2d.reshape(g.shape)


@jax.custom_vjp
def _grl(x, coeff):
    # output = input * 1.0  -> exact identity (no kernel on the forward path).
    return x


def _grl_fwd(x, coeff):
    return x, coeff


def _grl_bwd(coeff, g):
    # PyTorch returns (grad_output.neg() * coeff, None); the zero cotangent for
    # coeff is the JAX equivalent of "no gradient flows to coeff".
    return _neg_scale(g, coeff), jnp.zeros_like(coeff)


_grl.defvjp(_grl_fwd, _grl_bwd)


def gradient_reverse(x, coeff=1.0):
    """GradientReverse: identity forward; backward yields -coeff * grad_output.

    `coeff` may be a Python float or a traced jnp scalar; it reaches the Pallas
    kernel as an SMEM runtime scalar, so ramping it does not recompile anything.
    """
    return _grl(x, jnp.asarray(coeff, dtype=jnp.float32))


if __name__ == "__main__":
    key = jax.random.PRNGKey(0)

    # NCHW-style feature map, 2048 f32 elements -> kernel path, 2 grid steps.
    x = jax.random.normal(key, (2, 4, 16, 16), dtype=jnp.float32)

    # Forward: exact identity (matches `input * 1.0`).
    y = jax.block_until_ready(gradient_reverse(x, 1.0))
    assert y.shape == x.shape and y.dtype == x.dtype
    assert jnp.array_equal(y, x)

    # Backward through the Pallas kernel: expect -coeff * upstream grad.
    g = jax.block_until_ready(
        jax.grad(lambda a: jnp.sum(gradient_reverse(a, 1.0) * 2.0))(x))
    assert jnp.allclose(g, -2.0 * jnp.ones_like(x))

    # Ramped coeff as a traced scalar under jit: same compiled kernel, new value.
    step = jax.jit(
        lambda a, c: jax.grad(lambda t: jnp.sum(gradient_reverse(t, c) * 2.0))(a))
    g25 = jax.block_until_ready(step(x, jnp.float32(0.25)))
    g75 = jax.block_until_ready(step(x, jnp.float32(0.75)))
    assert jnp.allclose(g25, -0.5 * jnp.ones_like(x))
    assert jnp.allclose(g75, -1.5 * jnp.ones_like(x))

    # bf16 cotangent: byte-sized tiling keeps the same kernel shape-legal & fast.
    xb = jax.random.normal(jax.random.PRNGKey(2), (4, 8, 128)).astype(jnp.bfloat16)
    gb = jax.block_until_ready(
        jax.grad(lambda a: jnp.sum(gradient_reverse(a, 1.0)))(xb))
    assert jnp.allclose(gb.astype(jnp.float32),
                        -1.0 * jnp.ones((4, 8, 128), jnp.float32))

    # Non-128-multiple size: fused plain-JAX fallback (no extra HBM passes).
    x2 = jax.random.normal(jax.random.PRNGKey(1), (3, 5, 7, 11), dtype=jnp.float32)
    g2 = jax.block_until_ready(
        jax.grad(lambda a: jnp.sum(gradient_reverse(a, 0.5) * 3.0))(x2))
    assert jnp.allclose(g2, -1.5 * jnp.ones_like(x2))

    print("KERNEL_OK")
</pallas_src>

<mosaic_0001>
module attributes {stable_mosaic.version = 11 : i64} {
  func.func @_neg_scale_kernel(%arg0: i32, %arg1: memref<1x1xf32, #tpu.memory_space<smem>>, %arg2: memref<8x128xf32, #tpu.memory_space<vmem>>, %arg3: memref<8x128xf32, #tpu.memory_space<vmem>>) attributes {dimension_semantics = [#tpu.dimension_semantics<parallel>], iteration_bounds = array<i64: 2>, scalar_prefetch = 0 : i64, scratch_operands = 0 : i64, tpu.core_type = #tpu.core_type<tc>, window_params = [{transform_indices = @transform_0, window_bounds = array<i64: 1, 1>}, {transform_indices = @transform_1, window_bounds = array<i64: 8, 128>}, {transform_indices = @transform_2, window_bounds = array<i64: 8, 128>}]} {
    %c0 = arith.constant 0 : index
    %c0_0 = arith.constant 0 : index
    %0 = memref.load %arg1[%c0, %c0_0] : memref<1x1xf32, #tpu.memory_space<smem>>
    %cst = arith.constant 0.000000e+00 : f32
    %1 = arith.subf %cst, %0 : f32
    %c0_1 = arith.constant 0 : index
    %c0_2 = arith.constant 0 : index
    %2 = vector.load %arg2[%c0_1, %c0_2] : memref<8x128xf32, #tpu.memory_space<vmem>>, vector<8x128xf32>
    %3 = vector.broadcast %1 : f32 to vector<8x128xf32>
    %4 = arith.mulf %2, %3 : vector<8x128xf32>
    %c0_3 = arith.constant 0 : index
    %c0_4 = arith.constant 0 : index
    %5 = vector.load %arg3[%c0_3, %c0_4] : memref<8x128xf32, #tpu.memory_space<vmem>>, vector<8x128xf32>
    tpu.vector_store %arg3[%c0_3, %c0_4], %4 {strides = array<i32>} : memref<8x128xf32, #tpu.memory_space<vmem>>, vector<8x128xf32>,
    return
  }
  func.func @transform_0(%arg0: i32) -> (i32, i32) {
    %c0_i32 = arith.constant 0 : i32
    %c0_i32_0 = arith.constant 0 : i32
    %c0_i32_1 = arith.constant 0 : i32
    return %c0_i32, %c0_i32_0 : i32, i32
  }
  func.func @transform_1(%arg0: i32) -> (i32, i32) {
    %c0_i32 = arith.constant 0 : i32
    %c0_i32_0 = arith.constant 0 : i32
    return %arg0, %c0_i32 : i32, i32
  }
  func.func @transform_2(%arg0: i32) -> (i32, i32) {
    %c0_i32 = arith.constant 0 : i32
    %c0_i32_0 = arith.constant 0 : i32
    return %arg0, %c0_i32 : i32, i32
  }
}

</mosaic_0001>

<bundles_post_ra>
// kernel: tpu_custom_call.1
= control target key start
LH: loop header
LB: loop body
LE: loop exit
PB: predicated region body
PF: predicated region fallthrough
CT: control target
= control target key end

     0   :  { %s563_s0 = inlined_call_operand.<no memory space> [shape: f32[1,1], index: 0, kind: input, shape index: {}]   ;;  %s564_s1 = inlined_call_operand.hbm [shape: f32[16,128], index: 1, kind: input, shape index: {}, may-alias: {1,2}]   ;;  %s565_s2 = inlined_call_operand.hbm [shape: f32[16,128], index: 2, kind: output, shape index: {}, may-alias: {1,2}]  }
   0x1   :  { %7 = sst [smem:[#allocation2]] %s563_s0 }
   0x2   :  { %8 = vsyncpa [#allocation4], 0 }
   0x3   :  { %10 = vsyncpa [#allocation4 + $0x1], 0 }
   0x4   :  { %11 = vsyncpa [#allocation5], 0 }
   0x5   :  { %13 = vsyncpa [#allocation5 + $0x1], 0  ;;  %s422_s11 = smov 0   ;;  %s424_s12 = smov 0  }
   0x6   :  { %s426_s13 = smov 0   ;;  %s428_s14 = smov 0  }
   0x7 LB: > { %s443_s0 = sadd.s32 4294967295, %s400_s14   ;;  %s250_s15 = sadd.s32 4294967294, %s400_s14   ;;  %s400_s14 = sphi %s428_s14, %s582_s14   ;;  %s396_s13 = sphi %s426_s13, %s581_s13   ;;  %s392_s12 = sphi %s424_s12, %s580_s12   ;;  %s388_s11 = sphi %s422_s11, %s579_s11  }
   0x8   : > { %s447_s16 = sadd.s32 1, %s400_s14   ;;  %s47_s17 = sadd.s32 1, %s396_s13 }
   0x9   : > { %s44_s18 = ssub.s32 %s400_s14, %s447_s16  ;;  %p54_p0 = scmp.ne.s32.totalorder %s396_s13, %s392_s12 }
   0xa   : > { %p45_p1 = scmp.eq.s32.totalorder %s44_s18, 0  ;;  %p55_p2 = scmp.eq.s32.totalorder %s400_s14, 0 }
   0xb   : > { %p60_p3 = scmp.ne.s32.totalorder %s392_s12, %s388_s11  ;;  %p61_p4 = scmp.eq.s32.totalorder %s443_s0, 0 }
   0xc   : > { %s459_s19 = scalar_select %p45_p1, %s396_s13, %s47_s17  }
   0xd   : > { %p461_p5 = por %p55_p2, %p54_p0  ;;  %p465_p6 = por %p61_p4, %p60_p3 }
   0xe   : > { %p84_p7 = scmp.eq.s32.totalorder %s443_s0, 1  ;;  %p90_p8 = scmp.eq.s32.totalorder %s250_s15, 1 }
   0xf   : > { %s569_s21 = scalar_select %p465_p6, 1, 0 }
  0x10   : > { %p274_p10 = scmp.lt.s32.totalorder %s400_s14, 2  ;;  %p472_p11 = por %p84_p7, %p54_p0 }
  0x11   : > { %p476_p12 = por %p90_p8, %p60_p3  ;;  %s113_s24 = sand.u32 1, %s396_s13  }
  0x12   : > { %s570_s22 = scalar_select %p472_p11, 1, 0 }
  0x13   : > { %s571_s23 = scalar_select %p476_p12, 1, 0 }
  0x14   : > { %s254_s25 = sshll.u32 %s400_s14, 7  ;;  %s253_s26 = sshll.u32 %s113_s24, 3 }
  0x15   : > { %s485_s29 = scalar_lea.hbm %s564_s1, %s254_s25  ;;  %s117_s30 = scalar_lea.vmem [#allocation3], %s253_s26 }
  0x16   : > { %s124_s3 = sshll.u32 %s117_s30, 4  ;;  %p489_p13 = pnand %p274_p10, %p461_p5  ;;  %s493_s3 = int_to_ptr.vmem [resolvable:$true] %s124_s3 }
  0x17   : > { %s114_s5 = scalar_lea.sflag [#allocation4], %s113_s24  ;;  %s308_s6 = scalar_lea.hbm %s485_s29, 128 }
  0x18   : > { %p309_p2 = scmp.ne.s32.totalorder %s485_s29, %s308_s6  ;;  %p310_p3 = pneg %p489_p13 }
  0x19   : > { %s313_s9 = scalar_lea.hbm %s564_s1, 256  ;;  %p314_p5 = scmp.lt.s32.totalorder %s485_s29, %s564_s1 }
  0x1a   : > { %p311_p4 = pnand %p310_p3, %p309_p2  ;;  %p315_p8 = scmp.lt.s32.totalorder %s313_s9, %s308_s6 }
  0x1c   : > { %p312_p7 = pneg %p311_p4  ;;  %p316_p10 = por %p315_p8, %p314_p5 }
  0x1e   : > { %p317_p9 = pnand %p316_p10, %p312_p7 }
  0x20   : > { %320 = shalt.err (!%p317_p9)
}
  0x21   : > { %s321_s17 = scalar_lea.vmem %s493_s3, 128  ;;  %s402_s18 = smov [#allocation3]  }
  0x22   : > { %p322_p0 = scmp.ne.s32.totalorder %s493_s3, %s321_s17  ;;  %s326_s20 = sshll.u32 %s402_s18, 4  ;;  %s327_s20 = int_to_ptr.vmem [resolvable:$false] %s326_s20 }
  0x23   : > { %s328_s24 = scalar_lea.vmem %s327_s20, 256  ;;  %p329_p4 = scmp.lt.s32.totalorder %s493_s3, %s327_s20 }
  0x24   : > { %p324_p1 = pnand %p322_p0, %p310_p3  ;;  %p330_p12 = scmp.lt.s32.totalorder %s328_s24, %s321_s17 }
  0x26   : > { %p325_p2 = pneg %p324_p1  ;;  %p331_p11 = por %p330_p12, %p329_p4 }
  0x28   : > { %p332_p6 = pnand %p331_p11, %p325_p2 }
  0x2a   : > { %335 = shalt.err (!%p332_p6)
}
  0x2b   : > { %269 = dma.hbm_to_vmem [thread:$0]  (!%p489_p13), %s485_s29, 128, %s493_s3, %s114_s5  }
  0x2c   : > { %p573_p9 = scmp.lt.s32.totalorder %s400_s14, 3  ;;  %p574_p7 = scmp.ge.s32.totalorder %s400_s14, 1 }
  0x2e   : > { %p130_p0 = pnand %p574_p7, %p573_p9 }
  0x2f   : > { %s520_s25 = sand.u32 (!%p130_p0), 1, %s392_s12   ;;  %p575_p6 = scmp.ne.s32.totalorder (!%p130_p0), %s569_s21, 0 }
  0x30   : > { %133 = sbr.rel (%p130_p0) target bundleno = 80 (0x50), region = 28  ;;  %s256_s26 = sshll.u32 (!%p130_p0), %s520_s25, 3 }
  0x31   : > { %s136_s27 = scalar_lea.sflag (!%p130_p0), [#allocation4], %s520_s25  ;;  %s139_s28 = scalar_lea.vmem (!%p130_p0), [#allocation3], %s256_s26 }
  0x35   : > { %379 = dma.done.wait (%p575_p6), %s136_s27, 128  }
  0x36   : > { %381 = vsyncadd (%p575_p6), %s136_s27, 4294967168  ;;  %s160_s29 = sld [smem:[#allocation2]]  ;;  %s159_s30 = scalar_lea.vmem [#allocation6], %s256_s26  ;;  %v162_v0 = vld [vmem:[%s139_s28] sm:$0xff] }
  0x37   : > { %s180_s3 = sshll.u32 %s159_s30, 4  ;;  %s259_s5 = sshll.u32 %s443_s0, 7  ;;  %s181_s3 = int_to_ptr.vmem [resolvable:$true] %s180_s3 }
  0x38   : > { %s178_s8 = scalar_lea.hbm %s565_s2, %s259_s5  ;;  %s167_s9 = scalar_lea.sflag [#allocation5], %s520_s25 }
  0x39   : > { %s336_s21 = scalar_lea.vmem %s181_s3, 128  ;;  %p576_p12 = scmp.ne.s32.totalorder %s570_s22, 0 }
  0x3a   : > { %p337_p11 = scmp.ne.s32.totalorder %s181_s3, %s336_s21  ;;  %s403_s10 = smov [#allocation6]  }
  0x3b   : > { %s340_s15 = sshll.u32 %s403_s10, 4  ;;  %s341_s15 = int_to_ptr.vmem [resolvable:$false] %s340_s15 }
  0x3c   : > { %s161_s4 = ssub.f32 0.0, %s160_s29  ;;  %p338_p13 = pnand %p337_p11, %p576_p12 }
  0x3d   : > { %s342_s17 = scalar_lea.vmem %s341_s15, 256  ;;  %p343_p3 = scmp.lt.s32.totalorder %s181_s3, %s341_s15 }
  0x3e   : > { %v163_v1 = vstv %s161_s4  ;;  %p339_p1 = pneg %p338_p13  ;;  %p344_p5 = scmp.lt.s32.totalorder %s342_s17, %s336_s21 }
  0x3f   : > { %v164_v2 = vmul.f32 %v163_v1, %v162_v0 }
  0x40   : > { %p345_p8 = por %p344_p5, %p343_p3 }
  0x41   : > { %165 = vst [vmem:[%s159_s30] sm:$0xff] %v164_v2 }
  0x42   : > { %p346_p10 = pnand %p345_p8, %p339_p1 }
  0x44   : > { %349 = shalt.err (!%p346_p10)
}
  0x45   : > { %s350_s0 = scalar_lea.hbm %s178_s8, 128  ;;  %s354_s24 = scalar_lea.hbm %s565_s2, 256 }
  0x46   : > { %p351_p2 = scmp.ne.s32.totalorder %s178_s8, %s350_s0  ;;  %p355_p7 = scmp.lt.s32.totalorder %s178_s8, %s565_s2 }
  0x47   : > { %p356_p0 = scmp.lt.s32.totalorder %s354_s24, %s350_s0 }
  0x48   : > { %p352_p4 = pnand %p351_p2, %p576_p12 }
  0x49   : > { %p357_p6 = por %p356_p0, %p355_p7 }
  0x4a   : > { %p353_p9 = pneg %p352_p4 }
  0x4c   : > { %p358_p11 = pnand %p357_p6, %p353_p9 }
  0x4e   : > { %361 = shalt.err (!%p358_p11)
}
  0x4f   : > { %264 = dma.vmem_to_hbm [thread:$0]  (%p576_p12), %s181_s3, 128, %s178_s8, %s167_s9  }
  0x50 PF: > { %s192_s27 = sand.u32 1, %s388_s11   ;;  %p577_p13 = scmp.ne.s32.totalorder %s571_s23, 0 }
  0x51   : > { %p578_p1 = scmp.ge.s32.totalorder %s400_s14, 2  ;;  %s193_s28 = scalar_lea.sflag [#allocation5], %s192_s27 }
  0x53   : > { %p271_p3 = pnand %p578_p1, %p577_p13 }
  0x55   : > { %p272_p5 = pneg %p271_p3 }
  0x57   : > { %383 = dma.done.wait (%p272_p5), %s193_s28, 128  }
  0x58   : > { %385 = vsyncadd (%p272_p5), %s193_s28, 4294967168  ;;  %p16_p8 = scmp.ge.s32.totalorder %s447_s16, 4   ;;  %s579_s11 = smov %s392_s12 }
  0x59   : > { %s580_s12 = smov %s396_s13  ;;  %s581_s13 = smov %s459_s19 }
  0x5a   : > { %s582_s14 = smov %s447_s16  ;;  %18 = sbr.rel (!%p16_p8) target bundleno = 7 (0x7), region = 73 }
  0x5f   :  { %198 = vsyncpa [#allocation4], 1 }
  0x60   :  { %200 = vsyncpa [#allocation4 + $0x1], 1 }
  0x61   :  { %201 = vsyncpa [#allocation5], 1 }
  0x62   :  { %203 = vsyncpa [#allocation5 + $0x1], 1 }

</bundles_post_ra>
